<compile_context>
chip_gen: v6e
topology: v6e:2x2x1
jax: 0.10.0
libtpu: 0.0.40
codegen_flags: <defaults>
</compile_context>

<pallas_src>
import functools

import jax
import jax.numpy as jnp
from jax.experimental import pallas as pl
from jax.experimental.pallas import tpu as pltpu


def _round_up(n: int, m: int) -> int:
    return ((n + m - 1) // m) * m


def _cdiv(a: int, b: int) -> int:
    return (a + b - 1) // b


def _tpu_generation() -> int:
    """Best-effort TPU generation detection (0 = unknown)."""
    try:
        kind = jax.devices()[0].device_kind.lower()
    except Exception:  # pragma: no cover - defensive
        return 0
    if "7" in kind or "ironwood" in kind:
        return 7
    if "v6" in kind or "trillium" in kind:
        return 6
    if "v5" in kind:
        return 5
    if "v4" in kind:
        return 4
    return 0


def mlp_kernel(x_ref, w1_ref, b1_ref, w2_ref, b2_ref, o_ref, *, ew_dtype):
    """One batch tile of: relu(x @ W1t + b1) @ W2t + b2.

    Weights arrive pre-transposed to (K, N) layout, so both dots are plain
    (M,K)@(K,N) MXU matmuls with f32 accumulation and no in-kernel transposes.
    Elementwise (bias + ReLU) runs in `ew_dtype` (bf16 on v6e/v7x, f32 on
    v5e / unknown chips).
    """
    h = jnp.dot(x_ref[...], w1_ref[...], preferred_element_type=jnp.float32)
    h = jnp.maximum(h.astype(ew_dtype) + b1_ref[...], 0).astype(w2_ref.dtype)
    o = jnp.dot(h, w2_ref[...], preferred_element_type=jnp.float32)
    o_ref[...] = (o + b2_ref[...]).astype(o_ref.dtype)


@functools.partial(jax.jit, static_argnames=("block_b",))
def simple_model_forward(x, w1, b1, w2, b2, *, block_b=None):
    """SimpleModel forward.

    x:  (B, inputt)
    w1: (hidden, inputt)   b1: (hidden,)     -- PyTorch nn.Linear layout
    w2: (output, hidden)   b2: (output,)
    returns (B, output) float32
    """
    B, inputt = x.shape
    hidden, _ = w1.shape
    output, _ = w2.shape

    # ---- per-generation knobs ------------------------------------------------
    gen = _tpu_generation()
    num_cores = 2 if gen >= 7 else 1
    if block_b is None:
        block_b = 512 if gen in (5, 6) else 128
    if gen >= 7:
        vmem_limit = 48 * 1024 * 1024          # 64 MiB physical on v7x
    elif gen in (4, 5, 6):
        vmem_limit = 100 * 1024 * 1024         # 128 MiB physical
    else:
        vmem_limit = None
    ew_dtype = jnp.bfloat16 if gen in (6, 7) else jnp.float32
    compute_dtype = jnp.bfloat16
    # TODO(synk): on v5e a bf16 output store (cast to f32 in the wrapper) would
    # halve the writeback; kept f32 here for closer parity with the f32 ref.

    # ---- padded sizes / batch tiling ----------------------------------------
    hp = _round_up(hidden, 128)
    op = _round_up(output, 128)

    MIN_TM = 16  # bf16 packs 16 rows per sublane-pair; keep x tiles dense.
    n_tiles = max(1, _cdiv(B, block_b))
    if num_cores > 1 and B > MIN_TM and n_tiles % num_cores:
        # Give every TensorCore at least one batch tile.
        n_tiles = _round_up(n_tiles, num_cores)
    tm = min(_round_up(_cdiv(B, n_tiles), MIN_TM), _round_up(block_b, MIN_TM))
    n_tiles = _cdiv(B, tm)
    bp = n_tiles * tm

    # ---- operand prep (one-time HBM-side pad / transpose / cast) ------------
    xp = x.astype(compute_dtype)
    if bp != B:
        xp = jnp.pad(xp, ((0, bp - B), (0, 0)))

    # (hidden, in) -> pad -> (inputt, hp): dots contract on K with no in-kernel
    # transpose.
    w1t = jnp.pad(w1, ((0, hp - hidden), (0, 0))).T.astype(compute_dtype)
    b1p = jnp.pad(b1, (0, hp - hidden)).reshape(1, hp).astype(ew_dtype)
    w2t = jnp.pad(w2, ((0, op - output), (0, hp - hidden))).T.astype(compute_dtype)
    b2p = jnp.pad(b2, (0, op - output)).reshape(1, op).astype(jnp.float32)

    grid = (n_tiles,)

    # ---- cost hint for the XLA scheduler -------------------------------------
    itemsize_ew = jnp.dtype(ew_dtype).itemsize
    flops = 2 * bp * (inputt * hp + hp * op)
    bytes_accessed = (
        bp * inputt * 2                      # x (bf16)
        + (inputt * hp + hp * op) * 2        # weights (bf16)
        + hp * itemsize_ew + op * 4          # biases
        + bp * op * 4                        # output (f32)
    )
    cost = pl.CostEstimate(flops=flops, transcendentals=0,
                           bytes_accessed=bytes_accessed)

    cp_kwargs = dict(dimension_semantics=("parallel",))
    if vmem_limit is not None:
        cp_kwargs["vmem_limit_bytes"] = vmem_limit

    # NOTE: if inputt/hp ever outgrow a single VMEM block, add a K grid axis
    # marked "arbitrary" with a pltpu.VMEM f32 accumulator; not needed here.
    out = pl.pallas_call(
        functools.partial(mlp_kernel, ew_dtype=ew_dtype),
        out_shape=jax.ShapeDtypeStruct((bp, op), jnp.float32),
        grid_spec=pl.GridSpec(
            grid=grid,
            in_specs=[
                # Activations: tiled over batch -> software-pipelined DMA.
                pl.BlockSpec((tm, inputt), lambda i: (i, 0)),
                # Weights / biases: grid-invariant -> VMEM-resident, single
                # buffer (no wasted second pipeline buffer).
                pl.BlockSpec((inputt, hp), lambda i: (0, 0),
                             pipeline_mode=pl.Buffered(1)),
                pl.BlockSpec((1, hp), lambda i: (0, 0),
                             pipeline_mode=pl.Buffered(1)),
                pl.BlockSpec((hp, op), lambda i: (0, 0),
                             pipeline_mode=pl.Buffered(1)),
                pl.BlockSpec((1, op), lambda i: (0, 0),
                             pipeline_mode=pl.Buffered(1)),
            ],
            out_specs=pl.BlockSpec((tm, op), lambda i: (i, 0)),
        ),
        compiler_params=pltpu.CompilerParams(**cp_kwargs),
        cost_estimate=cost,
    )(xp, w1t, b1p, w2t, b2p)

    return out[:B, :output]


if __name__ == "__main__":
    # SimpleModel(inputt, hidden, output) — small deterministic shapes.
    batch, inputt, hidden, output = 8, 16, 32, 8

    key = jax.random.PRNGKey(0)
    kx, k1, k2, k3, k4 = jax.random.split(key, 5)

    x = jax.random.normal(kx, (batch, inputt), dtype=jnp.float32)
    w1 = jax.random.normal(k1, (hidden, inputt), dtype=jnp.float32) * 0.1
    b1 = jax.random.normal(k2, (hidden,), dtype=jnp.float32) * 0.1
    w2 = jax.random.normal(k3, (output, hidden), dtype=jnp.float32) * 0.1
    b2 = jax.random.normal(k4, (output,), dtype=jnp.float32) * 0.1

    out = simple_model_forward(x, w1, b1, w2, b2)
    jax.block_until_ready(out)
    assert out.shape == (batch, output)

    # Pure-JAX f32 reference (Linear -> ReLU -> Linear). Tolerance loosened
    # because the kernel feeds the MXU bf16 operands (f32 accumulation).
    ref = jnp.maximum(x @ w1.T + b1, 0.0) @ w2.T + b2
    assert jnp.allclose(out, ref, atol=5e-2, rtol=5e-2), "mismatch vs reference"

    print("KERNEL_OK")
</pallas_src>

<mosaic_0001>
module attributes {stable_mosaic.version = 11 : i64} {
  func.func @mlp_kernel(%arg0: i32, %arg1: memref<16x16xbf16, #tpu.memory_space<vmem>>, %arg2: memref<16x128xbf16, #tpu.memory_space<vmem>>, %arg3: memref<1x128xf32, #tpu.memory_space<vmem>>, %arg4: memref<128x128xbf16, #tpu.memory_space<vmem>>, %arg5: memref<1x128xf32, #tpu.memory_space<vmem>>, %arg6: memref<16x128xf32, #tpu.memory_space<vmem>>) attributes {dimension_semantics = [#tpu.dimension_semantics<parallel>], iteration_bounds = array<i64: 1>, scalar_prefetch = 0 : i64, scratch_operands = 0 : i64, tpu.core_type = #tpu.core_type<tc>, window_params = [{transform_indices = @transform_0, window_bounds = array<i64: 16, 16>}, {pipeline_mode = #tpu.pipeline_mode<synchronous>, transform_indices = @transform_1, window_bounds = array<i64: 16, 128>}, {pipeline_mode = #tpu.pipeline_mode<synchronous>, transform_indices = @transform_2, window_bounds = array<i64: 1, 128>}, {pipeline_mode = #tpu.pipeline_mode<synchronous>, transform_indices = @transform_3, window_bounds = array<i64: 128, 128>}, {pipeline_mode = #tpu.pipeline_mode<synchronous>, transform_indices = @transform_4, window_bounds = array<i64: 1, 128>}, {transform_indices = @transform_5, window_bounds = array<i64: 16, 128>}]} {
    %c0 = arith.constant 0 : index
    %c0_0 = arith.constant 0 : index
    %0 = vector.load %arg1[%c0, %c0_0] : memref<16x16xbf16, #tpu.memory_space<vmem>>, vector<16x16xbf16>
    %c0_1 = arith.constant 0 : index
    %c0_2 = arith.constant 0 : index
    %1 = vector.load %arg2[%c0_1, %c0_2] : memref<16x128xbf16, #tpu.memory_space<vmem>>, vector<16x128xbf16>
    %cst = arith.constant dense<0.000000e+00> : vector<16x128xf32>
    %2 = tpu.matmul %0, %1, %cst {dimension_numbers = #tpu.dot_dimension_numbers<[1], [0], [0], [1], [0, 0, 1, 1], [], []>} : vector<16x16xbf16>, vector<16x128xbf16>, vector<16x128xf32> -> vector<16x128xf32>
    %c0_3 = arith.constant 0 : index
    %c0_4 = arith.constant 0 : index
    %3 = vector.load %arg3[%c0_3, %c0_4] : memref<1x128xf32, #tpu.memory_space<vmem>>, vector<1x128xf32>
    %4 = vector.broadcast %3 : vector<1x128xf32> to vector<16x128xf32>
    %5 = arith.addf %2, %4 : vector<16x128xf32>
    %cst_5 = arith.constant 0.000000e+00 : f32
    %6 = vector.broadcast %cst_5 : f32 to vector<16x128xf32>
    %7 = arith.maximumf %5, %6 : vector<16x128xf32>
    %8 = arith.truncf %7 : vector<16x128xf32> to vector<16x128xbf16>
    %c0_6 = arith.constant 0 : index
    %c0_7 = arith.constant 0 : index
    %9 = vector.load %arg4[%c0_6, %c0_7] : memref<128x128xbf16, #tpu.memory_space<vmem>>, vector<128x128xbf16>
    %cst_8 = arith.constant dense<0.000000e+00> : vector<16x128xf32>
    %10 = tpu.matmul %8, %9, %cst_8 {dimension_numbers = #tpu.dot_dimension_numbers<[1], [0], [0], [1], [0, 0, 1, 1], [], []>} : vector<16x128xbf16>, vector<128x128xbf16>, vector<16x128xf32> -> vector<16x128xf32>
    %c0_9 = arith.constant 0 : index
    %c0_10 = arith.constant 0 : index
    %11 = vector.load %arg5[%c0_9, %c0_10] : memref<1x128xf32, #tpu.memory_space<vmem>>, vector<1x128xf32>
    %12 = vector.broadcast %11 : vector<1x128xf32> to vector<16x128xf32>
    %13 = arith.addf %10, %12 : vector<16x128xf32>
    %c0_11 = arith.constant 0 : index
    %c0_12 = arith.constant 0 : index
    %14 = vector.load %arg6[%c0_11, %c0_12] : memref<16x128xf32, #tpu.memory_space<vmem>>, vector<16x128xf32>
    tpu.vector_store %arg6[%c0_11, %c0_12], %13 {strides = array<i32>} : memref<16x128xf32, #tpu.memory_space<vmem>>, vector<16x128xf32>,
    return
  }
  func.func @transform_0(%arg0: i32) -> (i32, i32) {
    %c0_i32 = arith.constant 0 : i32
    %c0_i32_0 = arith.constant 0 : i32
    return %arg0, %c0_i32 : i32, i32
  }
  func.func @transform_1(%arg0: i32) -> (i32, i32) {
    %c0_i32 = arith.constant 0 : i32
    %c0_i32_0 = arith.constant 0 : i32
    %c0_i32_1 = arith.constant 0 : i32
    return %c0_i32, %c0_i32_0 : i32, i32
  }
  func.func @transform_2(%arg0: i32) -> (i32, i32) {
    %c0_i32 = arith.constant 0 : i32
    %c0_i32_0 = arith.constant 0 : i32
    %c0_i32_1 = arith.constant 0 : i32
    return %c0_i32, %c0_i32_0 : i32, i32
  }
  func.func @transform_3(%arg0: i32) -> (i32, i32) {
    %c0_i32 = arith.constant 0 : i32
    %c0_i32_0 = arith.constant 0 : i32
    %c0_i32_1 = arith.constant 0 : i32
    return %c0_i32, %c0_i32_0 : i32, i32
  }
  func.func @transform_4(%arg0: i32) -> (i32, i32) {
    %c0_i32 = arith.constant 0 : i32
    %c0_i32_0 = arith.constant 0 : i32
    %c0_i32_1 = arith.constant 0 : i32
    return %c0_i32, %c0_i32_0 : i32, i32
  }
  func.func @transform_5(%arg0: i32) -> (i32, i32) {
    %c0_i32 = arith.constant 0 : i32
    %c0_i32_0 = arith.constant 0 : i32
    return %arg0, %c0_i32 : i32, i32
  }
}

</mosaic_0001>

<bundles_post_ra>
// kernel: simple_model_forward.1
= control target key start
LH: loop header
LB: loop body
LE: loop exit
PB: predicated region body
PF: predicated region fallthrough
CT: control target
= control target key end

     0   :  { %v271_v0 = vmov 0.0   ;;  %vm272_vm0 = vmmov 0   ;;  %vm43_vm1 = vcmask 130048   ;;  %s345_s1 = inlined_call_operand.vmem [shape: bf16[16,128], index: 1, kind: input, shape index: {}]   ;;  %s346_s0 = inlined_call_operand.vmem [shape: bf16[16,16], index: 0, kind: input, shape index: {}]   ;;  %s347_s3 = inlined_call_operand.vmem [shape: bf16[128,128], index: 3, kind: input, shape index: {}]   ;;  %s348_s2 = inlined_call_operand.vmem [shape: f32[1,128], index: 2, kind: input, shape index: {}]   ;;  %s349_s4 = inlined_call_operand.vmem [shape: f32[1,128], index: 4, kind: input, shape index: {}]   ;;  %s350_s5 = inlined_call_operand.vmem [shape: f32[16,128], index: 5, kind: output, shape index: {}]  }
   0x1   :  { %233 = vmatprep.subr.bf16.mxu0 %v271_v0  ;;  %v261_v1 = vld [vmem:[%s345_s1] sm:$0xff]   ;;  %235 = vmatprep.mubr.msk.bf16.mxu0 %vm272_vm0, %v271_v0  ;;  %v263_v3 = vld [vmem:[%s347_s3 + $0x38] sm:$0xff]   ;;  %v264_v4 = vld [vmem:[%s347_s3 + $0x30] sm:$0xff]  }
   0x2   :  { %v262_v2 = vld [vmem:[%s346_s0] sm:$0xff]   ;;  %239 = vmatprep.subr.bf16.mxu1 %v271_v0  ;;  %255 = vmatprep.mubr.msk.bf16.mxu1 %vm272_vm0, %v271_v0  ;;  %v265_v5 = vld [vmem:[%s347_s3 + $0x28] sm:$0xff]   ;;  %v267_v7 = vld [vmem:[%s347_s3 + $0x18] sm:$0xff]  }
   0x3   :  { %234 = vmatpush3.bf16.msra.mxu0 %v261_v1  ;;  %240 = vmatpush3.bf16.msra.mxu1 %v263_v3  ;;  %v266_v6 = vld [vmem:[%s347_s3 + $0x20] sm:$0xff]   ;;  %v268_v8 = vld [vmem:[%s347_s3 + $0x10] sm:$0xff]   ;;  %v269_v9 = vld [vmem:[%s347_s3 + $0x8] sm:$0xff]  }
   0x4   :  { %241 = vmatprep.subr.bf16.mxu1 %v271_v0  ;;  %v270_v10 = vld [vmem:[%s347_s3] sm:$0xff]  }
   0x5   :  { %v209_v11 = vld [vmem:[%s348_s2] ss:$0 sm:$0xff] }
   0x6   :  { %236 = vmatmul.mubr.msk.bf16.vlgmr.msra.gmra.mxu0 %vm43_vm1, %v262_v2  ;;  %v213_v21 = vld [vmem:[%s349_s4] ss:$0 sm:$0xff] }
   0x7   :  { %242 = vmatpush3.bf16.msra.mxu1 %v264_v4 }
   0x8   :  { %243 = vmatprep.subr.bf16.mxu1 %v271_v0 }
   0xb   :  { %244 = vmatpush3.bf16.msra.mxu1 %v265_v5 }
   0xc   :  { %245 = vmatprep.subr.bf16.mxu1 %v271_v0 }
   0xf   :  { %246 = vmatpush3.bf16.msra.mxu1 %v266_v6 }
  0x10   :  { %247 = vmatprep.subr.bf16.mxu1 %v271_v0 }
  0x13   :  { %248 = vmatpush3.bf16.msra.mxu1 %v267_v7 }
  0x14   :  { %249 = vmatprep.subr.bf16.mxu1 %v271_v0 }
  0x17   :  { %250 = vmatpush3.bf16.msra.mxu1 %v268_v8 }
  0x18   :  { %251 = vmatprep.subr.bf16.mxu1 %v271_v0 }
  0x1b   :  { %252 = vmatpush3.bf16.msra.mxu1 %v269_v9 }
  0x1c   :  { %253 = vmatprep.subr.bf16.mxu1 %v271_v0 }
  0x1f   :  { %254 = vmatpush3.bf16.msra.mxu1 %v270_v10 }
  0xc6   :  { %v81_v12 = vpop.f32.mrf.mxu0 }
  0xc7   :  { %v82_v14 = vadd.f32 %v209_v11, %v81_v12 }
  0xc8   :  { %v237_v13 = vpop.f32.mrf.mxu0 }
  0xc9   :  { %v88_v18 = vmax.f32 %v82_v14, 0.0 }
  0xca   :  { %v84_v15 = vpop.f32.mrf.mxu0 }
  0xcb   :  { %v85_v16 = vadd.f32 %v209_v11, %v84_v15 }
  0xcc   :  { %v238_v17 = vpop.f32.mrf.mxu0 }
  0xcd   :  { %v89_v19 = vmax.f32 %v85_v16, 0.0 }
  0xcf   :  { %v90_v20 = vpack.c.bf16 %v89_v19, %v88_v18 }
  0xd1   :  { %256 = vmatmul.mubr.bf16.vlgmr.msra.gmra.mxu1 %v90_v20 }
 0x191   :  { %v196_v22 = vpop.f32.mrf.mxu1 }
 0x192   :  { %v197_v23 = vadd.f32 %v213_v21, %v196_v22 }
 0x193   :  { %v257_v24 = vpop.f32.mrf.mxu1 }
 0x194   :  { %203 = vst [vmem:[%s350_s5] sm:$0xff] %v197_v23 }
 0x195   :  { %v199_v25 = vpop.f32.mrf.mxu1 }
 0x196   :  { %v200_v26 = vadd.f32 %v213_v21, %v199_v25 }
 0x197   :  { %v258_v27 = vpop.f32.mrf.mxu1 }
 0x198   :  { %204 = vst [vmem:[%s350_s5 + $0x8] sm:$0xff] %v200_v26 }

</bundles_post_ra>
